<compile_context>
chip_gen: v7x
topology: tpu7x:2x2x1
jax: 0.10.0
libtpu: 0.0.40
codegen_flags: <defaults>
</compile_context>

<pallas_src>
import jax
import jax.numpy as jnp
from jax.experimental import pallas as pl
from jax.experimental.pallas import tpu as pltpu

# Fixed (non-learnable) hyperparameters from __init__ defaults.
W_CONST = 10.0
BETA = 500.0
HALF_BETA = 0.5 * BETA
EPS = 1e-06

_TILE_ROW_CAP = 1024   # 1024 rows x 1024 cols f32 = 4 MiB per pipeline buffer


def _edge_filter_kernel_general(p_ref, hbt_ref, x_ref, o_ref):
    """General p: numer = w * exp(p * log(clamp(x, eps)))."""
    p = p_ref[0]          # SMEM scalar
    hbt = hbt_ref[0]      # SMEM scalar: 0.5 * beta * tau (tau already clamped)
    x = x_ref[...].astype(jnp.float32)    # cast in-kernel; I/O stays native dtype

    xc = jnp.maximum(x, EPS)                       # base strictly positive
    numer = W_CONST * jnp.exp(p * jnp.log(xc))     # clamp(x,eps)^p
    # sigmoid(beta*(x-tau)) == 0.5*(1 + tanh(0.5*beta*(x-tau)))
    sig = 0.5 + 0.5 * jnp.tanh(HALF_BETA * x - hbt)
    o_ref[...] = (numer * sig).astype(o_ref.dtype)


def _edge_filter_kernel_sqrt(hbt_ref, x_ref, o_ref):
    """Fast path for p == 0.5 (module default): numer = w * sqrt(clamp(x, eps))."""
    hbt = hbt_ref[0]
    x = x_ref[...].astype(jnp.float32)

    numer = W_CONST * jnp.sqrt(jnp.maximum(x, EPS))
    sig = 0.5 + 0.5 * jnp.tanh(HALF_BETA * x - hbt)
    o_ref[...] = (numer * sig).astype(o_ref.dtype)


def _sublane_multiple(dtype):
    """Native sublane packing granularity for the I/O dtype."""
    return {4: 8, 2: 16, 1: 32}.get(jnp.dtype(dtype).itemsize, 8)


def _choose_cols(total, sub):
    """Largest lane-dense width in {1024,512,256,128} that divides `total`
    while leaving at least one native sublane-tile worth of rows."""
    for c in (1024, 512, 256, 128):
        if total % c == 0 and total // c >= sub:
            return c
    return 128


def _choose_tile_rows(rows, sub):
    """Pick the row-tile: multiple of `sub`, capped at _TILE_ROW_CAP, aiming for
    >= ~8 grid steps (pipeline overlap) and an even step count (v7x 2-TC balance)."""
    if rows <= sub:
        return rows                      # single block == full array dims
    base = min(_TILE_ROW_CAP, max(sub, (rows // 8) // sub * sub))
    cand = base
    while cand >= sub:
        if -(-rows // cand) % 2 == 0:    # even number of grid steps
            return cand
        cand -= sub
    return base


def edge_filter(x, p_param, tau_param):
    """x: float array of any shape (e.g. [B, C, H, W]).  p_param, tau_param: f32[1]."""
    orig_shape = x.shape
    dtype = x.dtype
    total = int(x.size)
    sub = _sublane_multiple(dtype)

    if total % 128 == 0:
        # Common case: pure (free) reshape to a lane-dense slab, no extra HBM pass.
        cols = _choose_cols(total, sub)
        rows = total // cols
        padded = False
        x2d = x.reshape(rows, cols)
    else:
        # Rare fallback: pad the flat array up to a multiple of 128 lanes.
        cols = 128
        rows = pl.cdiv(total, cols)
        padded = True
        x2d = jnp.pad(x.reshape(-1), (0, rows * cols - total)).reshape(rows, cols)

    tile_rows = _choose_tile_rows(rows, sub)
    grid = (pl.cdiv(rows, tile_rows),)   # ragged final block handled by Pallas

    # Replicate the in-place Parameter clamp done at the top of forward(),
    # and fold the scalar arithmetic on the host side.
    tau = jnp.clip(tau_param.astype(jnp.float32).reshape(-1)[:1], 0.01, 0.9)
    hbt = HALF_BETA * tau                               # (1,) = 0.5*beta*tau
    p = p_param.astype(jnp.float32).reshape(-1)[:1]     # (1,)

    # Trace-time selection of the p == 0.5 fast path when p is concrete.
    # (Under jit with p traced this falls back to the general kernel; the
    # kernel is bandwidth-bound so the extra EUP ops are hidden anyway.)
    use_sqrt = False
    try:
        use_sqrt = abs(float(p[0]) - 0.5) < 1e-12
    except (jax.errors.ConcretizationTypeError, TypeError):
        use_sqrt = False

    block = pl.BlockSpec((tile_rows, cols), lambda i: (i, 0))
    smem = pl.BlockSpec(memory_space=pltpu.MemorySpace.SMEM)
    compiler_params = pltpu.CompilerParams(
        dimension_semantics=("parallel",),
        vmem_limit_bytes=48 * 1024 * 1024,
    )
    out_shape = jax.ShapeDtypeStruct((rows, cols), dtype)

    if use_sqrt:
        out2d = pl.pallas_call(
            _edge_filter_kernel_sqrt,
            out_shape=out_shape,
            grid=grid,
            in_specs=[smem, block],
            out_specs=block,
            compiler_params=compiler_params,
        )(hbt, x2d)
    else:
        out2d = pl.pallas_call(
            _edge_filter_kernel_general,
            out_shape=out_shape,
            grid=grid,
            in_specs=[smem, smem, block],
            out_specs=block,
            compiler_params=compiler_params,
        )(p, hbt, x2d)

    if padded:
        return out2d.reshape(-1)[:total].reshape(orig_shape)
    return out2d.reshape(orig_shape)


def edge_filter_ref(x, p_param, tau_param):
    """Pure-JAX reference matching the PyTorch forward exactly."""
    tau = jnp.clip(tau_param[0], 0.01, 0.9)
    p = p_param[0]
    xf = x.astype(jnp.float32)
    num = W_CONST * jnp.power(jnp.maximum(xf, EPS), p)
    den = jnp.exp(jnp.minimum(-BETA * (xf - tau), 50.0)) + 1.0
    return (num / den).astype(x.dtype)


if __name__ == "__main__":
    root = jax.random.PRNGKey(0)
    k0, k1, k2 = jax.random.split(root, 3)

    tau_param = jnp.array([0.1], dtype=jnp.float32)
    p_half = jnp.array([0.5], dtype=jnp.float32)   # module default -> sqrt fast path
    p_gen = jnp.array([0.7], dtype=jnp.float32)    # non-default -> general path

    # 1) Module-default config at the nominal small shape (single-block grid).
    B, C, H, Wd = 2, 4, 16, 16
    x = jax.random.uniform(k0, (B, C, H, Wd), dtype=jnp.float32,
                           minval=-0.05, maxval=0.5)
    out = jax.block_until_ready(edge_filter(x, p_half, tau_param))
    ref = edge_filter_ref(x, p_half, tau_param)
    assert out.shape == x.shape and out.dtype == x.dtype
    assert jnp.allclose(out, ref, rtol=1e-5, atol=2e-5), "mismatch (p=0.5 path)"

    # 2) General-p path on a multi-step, evenly split grid (no padding path).
    x2 = jax.random.uniform(k1, (2, 8, 64, 64), dtype=jnp.float32,
                            minval=-0.05, maxval=0.5)
    out2 = jax.block_until_ready(edge_filter(x2, p_gen, tau_param))
    ref2 = edge_filter_ref(x2, p_gen, tau_param)
    assert jnp.allclose(out2, ref2, rtol=1e-5, atol=2e-5), "mismatch (general path)"

    # 3) Element count not a multiple of 128 -> exercises the rare pad fallback.
    x3 = jax.random.uniform(k2, (3, 3, 5, 7), dtype=jnp.float32,
                            minval=-0.05, maxval=0.5)
    out3 = jax.block_until_ready(edge_filter(x3, p_half, tau_param))
    ref3 = edge_filter_ref(x3, p_half, tau_param)
    assert out3.shape == x3.shape
    assert jnp.allclose(out3, ref3, rtol=1e-5, atol=2e-5), "mismatch (pad fallback)"

    print("KERNEL_OK")
</pallas_src>

<mosaic_0001>
module attributes {stable_mosaic.version = 11 : i64} {
  func.func @_edge_filter_kernel_sqrt(%arg0: i32, %arg1: memref<1xf32, #tpu.memory_space<smem>>, %arg2: memref<8x256xf32, #tpu.memory_space<vmem>>, %arg3: memref<8x256xf32, #tpu.memory_space<vmem>>) attributes {dimension_semantics = [#tpu.dimension_semantics<parallel>], iteration_bounds = array<i64: 1>, scalar_prefetch = 0 : i64, scratch_operands = 0 : i64, tpu.core_type = #tpu.core_type<tc>, window_params = [{transform_indices = @transform_0, window_bounds = array<i64: 1>}, {transform_indices = @transform_1, window_bounds = array<i64: 8, 256>}, {transform_indices = @transform_2, window_bounds = array<i64: 8, 256>}]} {
    %c0 = arith.constant 0 : index
    %0 = memref.load %arg1[%c0] : memref<1xf32, #tpu.memory_space<smem>>
    %c0_0 = arith.constant 0 : index
    %c0_1 = arith.constant 0 : index
    %1 = vector.load %arg2[%c0_0, %c0_1] : memref<8x256xf32, #tpu.memory_space<vmem>>, vector<8x256xf32>
    %cst = arith.constant 9.99999997E-7 : f32
    %2 = vector.broadcast %cst : f32 to vector<8x256xf32>
    %3 = arith.maximumf %1, %2 : vector<8x256xf32>
    %4 = math.sqrt %3 : vector<8x256xf32>
    %cst_2 = arith.constant 1.000000e+01 : f32
    %5 = vector.broadcast %cst_2 : f32 to vector<8x256xf32>
    %6 = arith.mulf %5, %4 : vector<8x256xf32>
    %cst_3 = arith.constant 2.500000e+02 : f32
    %7 = vector.broadcast %cst_3 : f32 to vector<8x256xf32>
    %8 = arith.mulf %7, %1 : vector<8x256xf32>
    %9 = vector.broadcast %0 : f32 to vector<8x256xf32>
    %10 = arith.subf %8, %9 : vector<8x256xf32>
    %11 = math.tanh %10 : vector<8x256xf32>
    %cst_4 = arith.constant 5.000000e-01 : f32
    %12 = vector.broadcast %cst_4 : f32 to vector<8x256xf32>
    %13 = arith.mulf %12, %11 : vector<8x256xf32>
    %cst_5 = arith.constant 5.000000e-01 : f32
    %14 = vector.broadcast %cst_5 : f32 to vector<8x256xf32>
    %15 = arith.addf %14, %13 : vector<8x256xf32>
    %16 = arith.mulf %6, %15 : vector<8x256xf32>
    %c0_6 = arith.constant 0 : index
    %c0_7 = arith.constant 0 : index
    %17 = vector.load %arg3[%c0_6, %c0_7] : memref<8x256xf32, #tpu.memory_space<vmem>>, vector<8x256xf32>
    tpu.vector_store %arg3[%c0_6, %c0_7], %16 {strides = array<i32>} : memref<8x256xf32, #tpu.memory_space<vmem>>, vector<8x256xf32>,
    return
  }
  func.func @transform_0(%arg0: i32) -> i32 {
    %c0_i32 = arith.constant 0 : i32
    %c0_i32_0 = arith.constant 0 : i32
    return %c0_i32 : i32
  }
  func.func @transform_1(%arg0: i32) -> (i32, i32) {
    %c0_i32 = arith.constant 0 : i32
    %c0_i32_0 = arith.constant 0 : i32
    return %arg0, %c0_i32 : i32, i32
  }
  func.func @transform_2(%arg0: i32) -> (i32, i32) {
    %c0_i32 = arith.constant 0 : i32
    %c0_i32_0 = arith.constant 0 : i32
    return %arg0, %c0_i32 : i32, i32
  }
}

</mosaic_0001>

<bundles_post_ra>
// kernel: tpu_custom_call.1
= control target key start
LH: loop header
LB: loop body
LE: loop exit
PB: predicated region body
PF: predicated region fallthrough
CT: control target
= control target key end

     0   :  { %8 = vsyncpa [#allocation4], 0  ;;  %s178_s0 = inlined_call_operand.<no memory space> [shape: f32[1], index: 0, kind: input, shape index: {}]   ;;  %s179_s1 = inlined_call_operand.hbm [shape: f32[8,256], index: 1, kind: input, shape index: {}]   ;;  %s180_s2 = inlined_call_operand.hbm [shape: f32[8,256], index: 2, kind: output, shape index: {}]  }
   0x1   :  { %9 = vsyncpa [#allocation5], 0  ;;  %s134_s9 = smov [#allocation3]   ;;  %s86_s13 = scalar_lea.hbm %s179_s1, 256 }
   0x2   :  { %s18_s10 = sshll.u32 %s134_s9, 4  ;;  %p87_p0 = scmp.ne.s32.totalorder %s179_s1, %s86_s13  ;;  %s19_s10 = int_to_ptr.vmem [resolvable:$true] %s18_s10 }
   0x3   :  { %p90_p1 = scmp.lt.u32.totalorder %s86_s13, %s179_s1 }
   0x5   :  { %p92_p2 = pnand %p90_p1, %p87_p0 }
   0x7   :  { %95 = shalt.err (!%p92_p2)
}
   0x8   :  { %s96_s18 = scalar_lea.vmem %s19_s10, 256  ;;  %p101_p4 = scmp.lt.s32.totalorder %s19_s10, %s19_s10 }
   0x9   :  { %p97_p3 = scmp.ne.s32.totalorder %s19_s10, %s96_s18  ;;  %p102_p5 = scmp.lt.s32.totalorder %s96_s18, %s96_s18 }
   0xb   :  { %p103_p6 = por %p102_p5, %p101_p4 }
   0xd   :  { %p104_p7 = pnand %p103_p6, %p97_p3 }
   0xf   :  { %107 = shalt.err (!%p104_p7)
}
  0x10   :  { %21 = dma.hbm_to_vmem [thread:$0]  %s179_s1, 256, %s19_s10, [#allocation4]  }
  0x11   :  { %130 = dma.done.wait [#allocation4], 256  }
  0x12   :  { %131 = vsyncadd [#allocation4], 4294967040  ;;  %v26_v0 = vld [vmem:[#allocation3] sm:$0xff]  ;;  %v48_v1 = vstv %s178_s0  ;;  %v27_v2 = vld [vmem:[#allocation3 + $0x8] sm:$0xff]  ;;  %s135_s0 = smov [#allocation6]  }
  0x13   :  { %v28_v3 = vmax.f32 %v26_v0, 1e-06  ;;  %v46_v4 = vmul.f32 250.0, %v26_v0  ;;  %v29_v5 = vmax.f32 %v27_v2, 1e-06  ;;  %v47_v6 = vmul.f32 250.0, %v27_v2 }
  0x14   :  { %s67_s1 = sshll.u32 %s135_s0, 4  ;;  %s68_s1 = int_to_ptr.vmem [resolvable:$true] %s67_s1 }
  0x15   :  { %78 = vrsqrt.f32 %v28_v3  ;;  %v49_v7 = vsub.f32 %v46_v4, %v48_v1  ;;  %v50_v8 = vsub.f32 %v47_v6, %v48_v1  ;;  %vm32_vm0 = vcmp.eq.f32.partialorder %v28_v3, inf  ;;  %s108_s23 = scalar_lea.vmem %s68_s1, 256  ;;  %p113_p9 = scmp.lt.s32.totalorder %s68_s1, %s68_s1 }
  0x16   :  { %80 = vrsqrt.f32 %v29_v5  ;;  %v35_v10 = vand.u32 2147483648, %v28_v3  ;;  %vm34_vm1 = vcmp.eq.f32.partialorder %v28_v3, 0.0  ;;  %vm39_vm2 = vcmp.eq.f32.partialorder %v29_v5, inf  ;;  %p109_p8 = scmp.ne.s32.totalorder %s68_s1, %s108_s23  ;;  %p114_p10 = scmp.lt.s32.totalorder %s108_s23, %s108_s23 }
  0x17   :  { %82 = vtanh.f32 %v49_v7  ;;  %v42_v13 = vand.u32 2147483648, %v29_v5  ;;  %vm41_vm3 = vcmp.eq.f32.partialorder %v29_v5, 0.0 }
  0x18   :  { %84 = vtanh.f32 %v50_v8  ;;  %p115_p11 = por %p114_p10, %p113_p9 }
  0x1a   :  { %p116_p12 = pnand %p115_p11, %p109_p8 }
  0x1f   :  { %v79_v9 = vpop.eup %78 }
  0x20   :  { %v81_v11 = vpop.eup %80  ;;  %v31_v12 = vmul.f32 %v79_v9, %v28_v3 }
  0x21   :  { %v38_v14 = vmul.f32 %v81_v11, %v29_v5  ;;  %v83_v15 = vpop.eup %82 }
  0x22   :  { %v33_v16 = vsel %vm32_vm0, %v28_v3, %v31_v12  ;;  %v85_v17 = vpop.eup %84  ;;  %v53_v19 = vmul.f32 0.5, %v83_v15 }
  0x23   :  { %v36_v18 = vsel %vm34_vm1, %v35_v10, %v33_v16  ;;  %v40_v20 = vsel %vm39_vm2, %v29_v5, %v38_v14  ;;  %v54_v23 = vmul.f32 0.5, %v85_v17 }
  0x24   :  { %v44_v21 = vmul.f32 10.0, %v36_v18  ;;  %v43_v22 = vsel %vm41_vm3, %v42_v13, %v40_v20  ;;  %v55_v24 = vadd.f32 0.5, %v53_v19 }
  0x25   :  { %v45_v25 = vmul.f32 10.0, %v43_v22  ;;  %v56_v26 = vadd.f32 0.5, %v54_v23 }
  0x26   :  { %v57_v27 = vmul.f32 %v55_v24, %v44_v21 }
  0x27   :  { %v58_v28 = vmul.f32 %v56_v26, %v45_v25 }
  0x28   :  { %59 = vst [vmem:[#allocation6] sm:$0xff] %v57_v27 }
  0x29   :  { %60 = vst [vmem:[#allocation6 + $0x8] sm:$0xff] %v58_v28 }
  0x2a   :  { %119 = shalt.err (!%p116_p12)
}
  0x2b   :  { %s120_s26 = scalar_lea.hbm %s180_s2, 256 }
  0x2c   :  { %p121_p13 = scmp.ne.s32.totalorder %s180_s2, %s120_s26  ;;  %p124_p0 = scmp.lt.u32.totalorder %s120_s26, %s180_s2 }
  0x2e   :  { %p126_p1 = pnand %p124_p0, %p121_p13 }
  0x30   :  { %129 = shalt.err (!%p126_p1)
}
  0x31   :  { %70 = dma.vmem_to_hbm [thread:$0]  %s68_s1, 256, %s180_s2, [#allocation5]  }
  0x32   :  { %132 = dma.done.wait [#allocation5], 256  }
  0x33   :  { %133 = vsyncadd [#allocation5], 4294967040 }
  0x34   :  { %74 = vsyncpa [#allocation4], 1 }
  0x35   :  { %75 = vsyncpa [#allocation5], 1 }

</bundles_post_ra>
